<compile_context>
chip_gen: v6e
topology: v6e:2x2x1
jax: 0.10.0
libtpu: 0.0.40
codegen_flags: <defaults>
</compile_context>

<pallas_src>
import functools

import jax
import jax.numpy as jnp
from jax import lax
from jax.experimental import pallas as pl
from jax.experimental.pallas import tpu as pltpu


def _as_i32(v):
    """Reinterpret a uint32 literal as a Python int in int32 range."""
    v &= 0xFFFFFFFF
    return v - (1 << 32) if v >= (1 << 31) else v


_MIX_C1 = _as_i32(0x7FEB352D)
_MIX_C2 = _as_i32(0x846CA68B)
_ONE_BITS = _as_i32(0x3F800001)   # exponent of 1.0f with mantissa LSB forced to 1
_SQRT2 = 1.4142135623730951


def _srl(x, k):
    """Logical right shift of an int32 bit pattern (arithmetic shift + mask)."""
    return (x >> k) & ((1 << (32 - k)) - 1)


def _mix32(x):
    """lowbias32 avalanche hash on int32 bit patterns (pure VPU integer ops)."""
    x = x ^ _srl(x, 16)
    x = x * _MIX_C1
    x = x ^ _srl(x, 15)
    x = x * _MIX_C2
    x = x ^ _srl(x, 16)
    return x


def _std_normal(bits):
    """Map int32 random bits -> standard normal N(0, 1) in float32.

    Uniform via the exponent-OR bit trick (mantissa into [1, 2), LSB forced to 1
    so u is strictly inside (0, 1)), then z = sqrt(2) * erfinv(2u - 1) using
    Giles' single-precision polynomial.  Needs only log/sqrt/where/FMA.
    """
    fbits = _srl(bits, 9) | _ONE_BITS
    f = lax.bitcast_convert_type(fbits, jnp.float32)       # uniform in (1, 2)
    x = 2.0 * f - 3.0                                       # uniform in (-1, 1)
    # (1 - x)(1 + x) is strictly positive; the max is pure paranoia.
    w = -jnp.log(jnp.maximum((1.0 - x) * (1.0 + x), 1e-30))

    # central branch (covers |z| up to ~3.7 sigma)
    wc = w - 2.5
    p = jnp.float32(2.81022636e-08)
    p = 3.43273939e-07 + p * wc
    p = -3.5233877e-06 + p * wc
    p = -4.39150654e-06 + p * wc
    p = 0.00021858087 + p * wc
    p = -0.00125372503 + p * wc
    p = -0.00417768164 + p * wc
    p = 0.246640727 + p * wc
    p_central = 1.50140941 + p * wc

    # tail branch
    ws = jnp.sqrt(w) - 3.0
    q = jnp.float32(-0.000200214257)
    q = 0.000100950558 + q * ws
    q = 0.00134934322 + q * ws
    q = -0.00367342844 + q * ws
    q = 0.00573950773 + q * ws
    q = -0.0076224613 + q * ws
    q = 0.00943887047 + q * ws
    q = 1.00167406 + q * ws
    p_tail = 2.83297682 + q * ws

    erfinv_x = jnp.where(w < 5.0, p_central, p_tail) * x
    return jnp.float32(_SQRT2) * erfinv_x


def adaptive_noise_kernel(x_ref, w_ref, o_ref, *, mean, std, seed_mix, hw):
    tm, tn = x_ref.shape
    i = pl.program_id(0)
    j = pl.program_id(1)

    # Counter = global element index in the (N*C, H*W) view -> unique per element,
    # so the noise stream does not depend on the tile sizes or execution order.
    # (For tensors >= 2^31 elements the counter wraps; harmless for noise.)
    rows = lax.broadcasted_iota(jnp.int32, (tm, tn), 0) + i * tm
    cols = lax.broadcasted_iota(jnp.int32, (tm, tn), 1) + j * tn
    ctr = rows * hw + cols
    z = _std_normal(_mix32(ctr ^ seed_mix))                 # N(0, 1), float32

    x = x_ref[...].astype(jnp.float32)                      # native dtype in, f32 math
    w = w_ref[...]                                          # (tm, 1), broadcasts over lanes
    delta = (w * std) * z                                   # weight * N(0, std)
    if mean != 0.0:                                         # static: mean is a Python float
        delta = delta + w * mean                            # weight * mean
    o_ref[...] = (x + delta).astype(o_ref.dtype)


def _pick_tile(total, align, target):
    """Largest multiple of `align` that divides `total` and is <= `target`.
    Falls back to `total` (a full-dim block is always layout-legal)."""
    if total <= target:
        return total
    t = (target // align) * align
    while t >= align:
        if total % t == 0:
            return t
        t -= align
    return total


def adaptive_noise_layer(x, weight, seed=0, *, mean=0.0, std=0.1,
                         training=True, apply_noise=True):
    """JAX/Pallas equivalent of AdaptiveNoiseLayer.forward (x is NCHW)."""
    if not (training and apply_noise):
        return x

    N, C, H, W = x.shape
    NC, HW = N * C, H * W

    # ~2 MiB of f32 per x/out block: big enough to amortize per-step overhead,
    # small enough that (double-buffered x + out + weight) stays well inside the
    # scoped-VMEM defaults on v5e/v6e/v7x without raising vmem_limit_bytes.
    TM = _pick_tile(NC, 8, 256)
    budget_elems = 512 * 1024
    TN = _pick_tile(HW, 128, max(128, budget_elems // TM))

    x2 = x.reshape(NC, HW)                                   # native dtype; no wrapper cast
    # row n*C + c gets weight[c]  (matches weight.view(1, -1, 1, 1) broadcast)
    w2 = jnp.broadcast_to(weight.astype(jnp.float32)[None, :], (N, C)).reshape(NC, 1)

    # Compile-time seed mix for the counter-based PRNG (changing `seed` recompiles).
    seed_mix = _as_i32((int(seed) * 0x9E3779B1) ^ 0x85EBCA77)

    kernel = functools.partial(adaptive_noise_kernel, mean=float(mean),
                               std=float(std), seed_mix=seed_mix, hw=HW)

    out2 = pl.pallas_call(
        kernel,
        out_shape=jax.ShapeDtypeStruct((NC, HW), x.dtype),
        grid=(NC // TM, HW // TN),
        in_specs=[
            pl.BlockSpec((TM, TN), lambda i, j: (i, j)),     # x tile
            pl.BlockSpec((TM, 1), lambda i, j: (i, 0)),      # per-row weight: block index
                                                             # constant over inner j loop,
                                                             # so it is not re-DMA'd per step
        ],
        out_specs=pl.BlockSpec((TM, TN), lambda i, j: (i, j)),
        input_output_aliases={0: 0},                         # out reuses x2's HBM buffer
        compiler_params=pltpu.CompilerParams(
            dimension_semantics=("parallel", "parallel")),   # stateless RNG -> safe on 2-TC v7x
    )(x2, w2)

    return out2.reshape(N, C, H, W)


if __name__ == "__main__":
    # Deterministic setup at small shapes consistent with the module.
    N, C, H, W = 2, 4, 16, 16
    mean, std = 0.0, 0.1

    key = jax.random.PRNGKey(0)
    x = jax.random.normal(key, (N, C, H, W), dtype=jnp.float32)
    # nn.Parameter(torch.full((num_channels,), std))
    weight = jnp.full((C,), std, dtype=jnp.float32)

    out = adaptive_noise_layer(x, weight, seed=0, mean=mean, std=std,
                               training=True, apply_noise=True)
    out = jax.block_until_ready(out)

    assert out.shape == x.shape and out.dtype == x.dtype
    assert bool(jnp.all(jnp.isfinite(out)))
    # noise path actually perturbed the input
    assert bool(jnp.any(out != x))

    # residual / (weight * std) should look like N(mean, 1) — loose sanity bounds
    resid = (out - x) / (float(weight[0]) * std)
    assert abs(float(jnp.mean(resid)) - mean) < 0.2
    assert 0.7 < float(jnp.std(resid)) < 1.3

    # eval path is identity
    out_eval = adaptive_noise_layer(x, weight, seed=0, training=False)
    assert bool(jnp.all(out_eval == x))

    print("KERNEL_OK")
</pallas_src>

<mosaic_0001>
module attributes {stable_mosaic.version = 11 : i64} {
  func.func @adaptive_noise_kernel(%arg0: i32, %arg1: i32, %arg2: memref<8x256xf32, #tpu.memory_space<vmem>>, %arg3: memref<8x1xf32, #tpu.memory_space<vmem>>, %arg4: memref<8x256xf32, #tpu.memory_space<vmem>>) attributes {dimension_semantics = [#tpu.dimension_semantics<parallel>, #tpu.dimension_semantics<parallel>], iteration_bounds = array<i64: 1, 1>, scalar_prefetch = 0 : i64, scratch_operands = 0 : i64, tpu.core_type = #tpu.core_type<tc>, window_params = [{transform_indices = @transform_0, window_bounds = array<i64: 8, 256>}, {transform_indices = @transform_1, window_bounds = array<i64: 8, 1>}, {transform_indices = @transform_2, window_bounds = array<i64: 8, 256>}]} {
    %0 = tpu.iota {dimensions = array<i32: 0>} : vector<8x256xi32>
    %c8_i32 = arith.constant 8 : i32
    %1 = arith.muli %arg0, %c8_i32 : i32
    %2 = vector.broadcast %1 : i32 to vector<8x256xi32>
    %3 = arith.addi %0, %2 : vector<8x256xi32>
    %4 = tpu.iota {dimensions = array<i32: 1>} : vector<8x256xi32>
    %c256_i32 = arith.constant 256 : i32
    %5 = arith.muli %arg1, %c256_i32 : i32
    %6 = vector.broadcast %5 : i32 to vector<8x256xi32>
    %7 = arith.addi %4, %6 : vector<8x256xi32>
    %c256_i32_0 = arith.constant 256 : i32
    %8 = vector.broadcast %c256_i32_0 : i32 to vector<8x256xi32>
    %9 = arith.muli %3, %8 : vector<8x256xi32>
    %10 = arith.addi %9, %7 : vector<8x256xi32>
    %c-2048144777_i32 = arith.constant -2048144777 : i32
    %11 = vector.broadcast %c-2048144777_i32 : i32 to vector<8x256xi32>
    %12 = arith.xori %10, %11 : vector<8x256xi32>
    %c16_i32 = arith.constant 16 : i32
    %13 = vector.broadcast %c16_i32 : i32 to vector<8x256xi32>
    %14 = arith.shrsi %12, %13 : vector<8x256xi32>
    %c65535_i32 = arith.constant 65535 : i32
    %15 = vector.broadcast %c65535_i32 : i32 to vector<8x256xi32>
    %16 = arith.andi %14, %15 : vector<8x256xi32>
    %17 = arith.xori %12, %16 : vector<8x256xi32>
    %c2146121005_i32 = arith.constant 2146121005 : i32
    %18 = vector.broadcast %c2146121005_i32 : i32 to vector<8x256xi32>
    %19 = arith.muli %17, %18 : vector<8x256xi32>
    %c15_i32 = arith.constant 15 : i32
    %20 = vector.broadcast %c15_i32 : i32 to vector<8x256xi32>
    %21 = arith.shrsi %19, %20 : vector<8x256xi32>
    %c131071_i32 = arith.constant 131071 : i32
    %22 = vector.broadcast %c131071_i32 : i32 to vector<8x256xi32>
    %23 = arith.andi %21, %22 : vector<8x256xi32>
    %24 = arith.xori %19, %23 : vector<8x256xi32>
    %c-2073254261_i32 = arith.constant -2073254261 : i32
    %25 = vector.broadcast %c-2073254261_i32 : i32 to vector<8x256xi32>
    %26 = arith.muli %24, %25 : vector<8x256xi32>
    %c16_i32_1 = arith.constant 16 : i32
    %27 = vector.broadcast %c16_i32_1 : i32 to vector<8x256xi32>
    %28 = arith.shrsi %26, %27 : vector<8x256xi32>
    %c65535_i32_2 = arith.constant 65535 : i32
    %29 = vector.broadcast %c65535_i32_2 : i32 to vector<8x256xi32>
    %30 = arith.andi %28, %29 : vector<8x256xi32>
    %31 = arith.xori %26, %30 : vector<8x256xi32>
    %c9_i32 = arith.constant 9 : i32
    %32 = vector.broadcast %c9_i32 : i32 to vector<8x256xi32>
    %33 = arith.shrsi %31, %32 : vector<8x256xi32>
    %c8388607_i32 = arith.constant 8388607 : i32
    %34 = vector.broadcast %c8388607_i32 : i32 to vector<8x256xi32>
    %35 = arith.andi %33, %34 : vector<8x256xi32>
    %c1065353217_i32 = arith.constant 1065353217 : i32
    %36 = vector.broadcast %c1065353217_i32 : i32 to vector<8x256xi32>
    %37 = arith.ori %35, %36 : vector<8x256xi32>
    %38 = tpu.bitcast %37 : vector<8x256xi32> -> vector<8x256xf32>
    %cst = arith.constant 2.000000e+00 : f32
    %39 = vector.broadcast %cst : f32 to vector<8x256xf32>
    %40 = arith.mulf %39, %38 : vector<8x256xf32>
    %cst_3 = arith.constant 3.000000e+00 : f32
    %41 = vector.broadcast %cst_3 : f32 to vector<8x256xf32>
    %42 = arith.subf %40, %41 : vector<8x256xf32>
    %cst_4 = arith.constant 1.000000e+00 : f32
    %43 = vector.broadcast %cst_4 : f32 to vector<8x256xf32>
    %44 = arith.subf %43, %42 : vector<8x256xf32>
    %cst_5 = arith.constant 1.000000e+00 : f32
    %45 = vector.broadcast %cst_5 : f32 to vector<8x256xf32>
    %46 = arith.addf %45, %42 : vector<8x256xf32>
    %47 = arith.mulf %44, %46 : vector<8x256xf32>
    %cst_6 = arith.constant 1.000000e-30 : f32
    %48 = vector.broadcast %cst_6 : f32 to vector<8x256xf32>
    %49 = arith.maximumf %47, %48 : vector<8x256xf32>
    %50 = math.log %49 : vector<8x256xf32>
    %cst_7 = arith.constant 0.000000e+00 : f32
    %51 = vector.broadcast %cst_7 : f32 to vector<8x256xf32>
    %52 = arith.subf %51, %50 : vector<8x256xf32>
    %cst_8 = arith.constant 2.500000e+00 : f32
    %53 = vector.broadcast %cst_8 : f32 to vector<8x256xf32>
    %54 = arith.subf %52, %53 : vector<8x256xf32>
    %cst_9 = arith.constant 2.81022636E-8 : f32
    %55 = vector.broadcast %cst_9 : f32 to vector<8x256xf32>
    %56 = arith.mulf %55, %54 : vector<8x256xf32>
    %cst_10 = arith.constant 3.43273939E-7 : f32
    %57 = vector.broadcast %cst_10 : f32 to vector<8x256xf32>
    %58 = arith.addf %57, %56 : vector<8x256xf32>
    %59 = arith.mulf %58, %54 : vector<8x256xf32>
    %cst_11 = arith.constant -3.5233877E-6 : f32
    %60 = vector.broadcast %cst_11 : f32 to vector<8x256xf32>
    %61 = arith.addf %60, %59 : vector<8x256xf32>
    %62 = arith.mulf %61, %54 : vector<8x256xf32>
    %cst_12 = arith.constant -4.39150654E-6 : f32
    %63 = vector.broadcast %cst_12 : f32 to vector<8x256xf32>
    %64 = arith.addf %63, %62 : vector<8x256xf32>
    %65 = arith.mulf %64, %54 : vector<8x256xf32>
    %cst_13 = arith.constant 2.1858087E-4 : f32
    %66 = vector.broadcast %cst_13 : f32 to vector<8x256xf32>
    %67 = arith.addf %66, %65 : vector<8x256xf32>
    %68 = arith.mulf %67, %54 : vector<8x256xf32>
    %cst_14 = arith.constant -0.00125372503 : f32
    %69 = vector.broadcast %cst_14 : f32 to vector<8x256xf32>
    %70 = arith.addf %69, %68 : vector<8x256xf32>
    %71 = arith.mulf %70, %54 : vector<8x256xf32>
    %cst_15 = arith.constant -0.00417768164 : f32
    %72 = vector.broadcast %cst_15 : f32 to vector<8x256xf32>
    %73 = arith.addf %72, %71 : vector<8x256xf32>
    %74 = arith.mulf %73, %54 : vector<8x256xf32>
    %cst_16 = arith.constant 0.246640727 : f32
    %75 = vector.broadcast %cst_16 : f32 to vector<8x256xf32>
    %76 = arith.addf %75, %74 : vector<8x256xf32>
    %77 = arith.mulf %76, %54 : vector<8x256xf32>
    %cst_17 = arith.constant 1.50140941 : f32
    %78 = vector.broadcast %cst_17 : f32 to vector<8x256xf32>
    %79 = arith.addf %78, %77 : vector<8x256xf32>
    %80 = math.sqrt %52 : vector<8x256xf32>
    %cst_18 = arith.constant 3.000000e+00 : f32
    %81 = vector.broadcast %cst_18 : f32 to vector<8x256xf32>
    %82 = arith.subf %80, %81 : vector<8x256xf32>
    %cst_19 = arith.constant -2.00214257E-4 : f32
    %83 = vector.broadcast %cst_19 : f32 to vector<8x256xf32>
    %84 = arith.mulf %83, %82 : vector<8x256xf32>
    %cst_20 = arith.constant 1.00950558E-4 : f32
    %85 = vector.broadcast %cst_20 : f32 to vector<8x256xf32>
    %86 = arith.addf %85, %84 : vector<8x256xf32>
    %87 = arith.mulf %86, %82 : vector<8x256xf32>
    %cst_21 = arith.constant 0.00134934322 : f32
    %88 = vector.broadcast %cst_21 : f32 to vector<8x256xf32>
    %89 = arith.addf %88, %87 : vector<8x256xf32>
    %90 = arith.mulf %89, %82 : vector<8x256xf32>
    %cst_22 = arith.constant -0.00367342844 : f32
    %91 = vector.broadcast %cst_22 : f32 to vector<8x256xf32>
    %92 = arith.addf %91, %90 : vector<8x256xf32>
    %93 = arith.mulf %92, %82 : vector<8x256xf32>
    %cst_23 = arith.constant 0.00573950773 : f32
    %94 = vector.broadcast %cst_23 : f32 to vector<8x256xf32>
    %95 = arith.addf %94, %93 : vector<8x256xf32>
    %96 = arith.mulf %95, %82 : vector<8x256xf32>
    %cst_24 = arith.constant -0.0076224613 : f32
    %97 = vector.broadcast %cst_24 : f32 to vector<8x256xf32>
    %98 = arith.addf %97, %96 : vector<8x256xf32>
    %99 = arith.mulf %98, %82 : vector<8x256xf32>
    %cst_25 = arith.constant 0.00943887047 : f32
    %100 = vector.broadcast %cst_25 : f32 to vector<8x256xf32>
    %101 = arith.addf %100, %99 : vector<8x256xf32>
    %102 = arith.mulf %101, %82 : vector<8x256xf32>
    %cst_26 = arith.constant 1.00167406 : f32
    %103 = vector.broadcast %cst_26 : f32 to vector<8x256xf32>
    %104 = arith.addf %103, %102 : vector<8x256xf32>
    %105 = arith.mulf %104, %82 : vector<8x256xf32>
    %cst_27 = arith.constant 2.83297682 : f32
    %106 = vector.broadcast %cst_27 : f32 to vector<8x256xf32>
    %107 = arith.addf %106, %105 : vector<8x256xf32>
    %cst_28 = arith.constant 5.000000e+00 : f32
    %108 = vector.broadcast %cst_28 : f32 to vector<8x256xf32>
    %109 = arith.cmpf olt, %52, %108 : vector<8x256xf32>
    %110 = arith.select %109, %79, %107 : vector<8x256xi1>, vector<8x256xf32>
    %111 = arith.mulf %110, %42 : vector<8x256xf32>
    %cst_29 = arith.constant 1.41421354 : f32
    %112 = vector.broadcast %cst_29 : f32 to vector<8x256xf32>
    %113 = arith.mulf %112, %111 : vector<8x256xf32>
    %c0 = arith.constant 0 : index
    %c0_30 = arith.constant 0 : index
    %114 = vector.load %arg2[%c0, %c0_30] : memref<8x256xf32, #tpu.memory_space<vmem>>, vector<8x256xf32>
    %c0_31 = arith.constant 0 : index
    %c0_32 = arith.constant 0 : index
    %115 = vector.load %arg3[%c0_31, %c0_32] : memref<8x1xf32, #tpu.memory_space<vmem>>, vector<8x1xf32>
    %cst_33 = arith.constant 1.000000e-01 : f32
    %116 = vector.broadcast %cst_33 : f32 to vector<8x1xf32>
    %117 = arith.mulf %115, %116 : vector<8x1xf32>
    %118 = vector.broadcast %117 : vector<8x1xf32> to vector<8x256xf32>
    %119 = arith.mulf %118, %113 : vector<8x256xf32>
    %120 = arith.addf %114, %119 : vector<8x256xf32>
    %c0_34 = arith.constant 0 : index
    %c0_35 = arith.constant 0 : index
    %121 = vector.load %arg4[%c0_34, %c0_35] : memref<8x256xf32, #tpu.memory_space<vmem>>, vector<8x256xf32>
    tpu.vector_store %arg4[%c0_34, %c0_35], %120 {strides = array<i32>} : memref<8x256xf32, #tpu.memory_space<vmem>>, vector<8x256xf32>,
    return
  }
  func.func @transform_0(%arg0: i32, %arg1: i32) -> (i32, i32) {
    %c0_i32 = arith.constant 0 : i32
    return %arg0, %arg1 : i32, i32
  }
  func.func @transform_1(%arg0: i32, %arg1: i32) -> (i32, i32) {
    %c0_i32 = arith.constant 0 : i32
    %c0_i32_0 = arith.constant 0 : i32
    return %arg0, %c0_i32 : i32, i32
  }
  func.func @transform_2(%arg0: i32, %arg1: i32) -> (i32, i32) {
    %c0_i32 = arith.constant 0 : i32
    return %arg0, %arg1 : i32, i32
  }
}

</mosaic_0001>

<bundles_post_ra>
// kernel: tpu_custom_call.1
= control target key start
LH: loop header
LB: loop body
LE: loop exit
PB: predicated region body
PF: predicated region fallthrough
CT: control target
= control target key end

     0   :  { %7 = vsyncpa [#allocation3], 0  ;;  %s356_s0 = inlined_call_operand.hbm [shape: f32[8,256], index: 0, kind: input, shape index: {}, may-alias: {0,2}]   ;;  %s357_s1 = inlined_call_operand.vmem [shape: f32[8,1], index: 1, kind: input, shape index: {}]   ;;  %s358_s2 = inlined_call_operand.hbm [shape: f32[8,256], index: 2, kind: output, shape index: {}, may-alias: {0,2}]  }
   0x1   :  { %8 = vsyncpa [#allocation4], 0  ;;  %s279_s9 = smov [#allocation2]  }
   0x2   :  { %s15_s10 = sshll.u32 %s279_s9, 4  ;;  %s16_s10 = int_to_ptr.vmem [resolvable:$true] %s15_s10 }
   0x3   :  { %s243_s11 = scalar_lea.vmem %s16_s10, 256  ;;  %p248_p1 = scmp.lt.s32.totalorder %s16_s10, %s16_s10 }
   0x4   :  { %p244_p0 = scmp.ne.s32.totalorder %s16_s10, %s243_s11  ;;  %p249_p2 = scmp.lt.s32.totalorder %s243_s11, %s243_s11 }
   0x6   :  { %p250_p3 = por %p249_p2, %p248_p1 }
   0x8   :  { %p251_p4 = pnand %p250_p3, %p244_p0 }
   0xa   :  { %254 = shalt.err (!%p251_p4)
}
   0xb   :  { %18 = dma.hbm_to_vmem [thread:$0]  %s356_s0, 256, %s16_s10, [#allocation3]  }
   0xc   :  { %275 = dma.done.wait [#allocation3], 256  }
   0xd   :  { %276 = vsyncadd [#allocation3], 4294967040  ;;  %v24_v0 = vlaneseq  ;;  %v280_v1 = vmov 0   ;;  %v181_v8 = vld [vmem:[%s357_s1] sm:$0xff]  ;;  %s281_s0 = smov [#allocation5]  }
   0xe   :  { %226 = vset.pattern.permute.xlu0 %v280_v1  ;;  %v182_v9 = vmul.f32 0.1, %v181_v8  ;;  %s200_s1 = sshll.u32 %s281_s0, 4  ;;  %s201_s1 = int_to_ptr.vmem [resolvable:$true] %s200_s1 }
   0xf   :  { %v25_v2 = vshrl.u32 %v24_v0, 7  ;;  %v30_v3 = vand.u32 127, %v24_v0  ;;  %s255_s16 = scalar_lea.vmem %s201_s1, 256  ;;  %p260_p6 = scmp.lt.s32.totalorder %s201_s1, %s201_s1 }
  0x10   :  { %185 = vperm.xlu0 %226, %v182_v9   ;;  %p256_p5 = scmp.ne.s32.totalorder %s201_s1, %s255_s16  ;;  %p261_p7 = scmp.lt.s32.totalorder %s255_s16, %s255_s16 }
  0x11   :  { %v31_v4 = vadd.s32 128, %v30_v3  ;;  %v36_v5 = vmul.u32 256, %v25_v2 }
  0x12   :  { %p262_p8 = por %p261_p7, %p260_p6 }
  0x13   :  { %v37_v6 = vadd.s32 %v36_v5, %v30_v3  ;;  %v38_v7 = vadd.s32 %v36_v5, %v31_v4 }
  0x14   :  { %p263_p9 = pnand %p262_p8, %p256_p5 }
  0x15   :  { %v39_v10 = vxor.u32 2246822519, %v37_v6  ;;  %v40_v11 = vxor.u32 2246822519, %v38_v7 }
  0x17   :  { %v209_v12 = vshrl.u32 %v39_v10, 16  ;;  %v210_v13 = vshrl.u32 %v40_v11, 16 }
  0x19   :  { %v45_v14 = vxor.u32 %v209_v12, %v39_v10  ;;  %v46_v15 = vxor.u32 %v210_v13, %v40_v11 }
  0x1b   :  { %v47_v16 = vmul.u32 2146121005, %v45_v14  ;;  %v48_v17 = vmul.u32 2146121005, %v46_v15 }
  0x1d   :  { %v211_v18 = vshrl.u32 %v47_v16, 15  ;;  %v212_v19 = vshrl.u32 %v48_v17, 15 }
  0x1f   :  { %v53_v20 = vxor.u32 %v211_v18, %v47_v16  ;;  %v54_v21 = vxor.u32 %v212_v19, %v48_v17 }
  0x21   :  { %v55_v22 = vmul.u32 2221713035, %v53_v20  ;;  %v56_v23 = vmul.u32 2221713035, %v54_v21 }
  0x23   :  { %v213_v24 = vshrl.u32 %v55_v22, 16  ;;  %v214_v25 = vshrl.u32 %v56_v23, 16 }
  0x25   :  { %v61_v26 = vxor.u32 %v213_v24, %v55_v22  ;;  %v62_v27 = vxor.u32 %v214_v25, %v56_v23 }
  0x27   :  { %v215_v28 = vshrl.u32 %v61_v26, 9  ;;  %v216_v29 = vshrl.u32 %v62_v27, 9 }
  0x29   :  { %v67_v30 = vor.u32 1065353217, %v215_v28  ;;  %v68_v31 = vor.u32 1065353217, %v216_v29 }
  0x2b   :  { %v71_v32 = vmul.f32 2.0, %v67_v30  ;;  %v72_v33 = vmul.f32 2.0, %v68_v31 }
  0x2d   :  { %v303_v34 = vadd.f32 -3.0, %v71_v32  ;;  %v305_v35 = vadd.f32 -3.0, %v72_v33 }
  0x2f   :  { %v75_v36 = vsub.f32 1.0, %v303_v34  ;;  %v76_v37 = vsub.f32 1.0, %v305_v35  ;;  %v77_v38 = vadd.f32 1.0, %v303_v34  ;;  %v78_v39 = vadd.f32 1.0, %v305_v35 }
  0x31   :  { %v79_v40 = vmul.f32 %v77_v38, %v75_v36  ;;  %v80_v41 = vmul.f32 %v78_v39, %v76_v37 }
  0x33   :  { %v81_v42 = vmax.f32 %v79_v40, 1e-30  ;;  %v82_v43 = vmax.f32 %v80_v41, 1e-30 }
  0x35   :  { %227 = vlog2.f32 %v81_v42 }
  0x36   :  { %229 = vlog2.f32 %v82_v43 }
  0x42   :  { %v228_v44 = vpop.eup %227 }
  0x43   :  { %v230_v45 = vpop.eup %229  ;;  %v84_v46 = vmul.f32 0.6931472, %v228_v44 }
  0x44   :  { %v86_v47 = vmul.f32 0.6931472, %v230_v45 }
  0x45   :  { %v311_v48 = vsub.f32 0.0, %v84_v46 }
  0x46   :  { %v313_v49 = vsub.f32 0.0, %v86_v47 }
  0x47   :  { %v316_v50 = vadd.f32 -2.5, %v311_v48  ;;  %231 = vrsqrt.f32 %v311_v48  ;;  %vm125_vm0 = vcmp.eq.f32.partialorder %v311_v48, inf  ;;  %v128_v61 = vand.u32 2147483648, %v311_v48 }
  0x48   :  { %v320_v51 = vadd.f32 -2.5, %v313_v49  ;;  %233 = vrsqrt.f32 %v313_v49  ;;  %vm127_vm1 = vcmp.eq.f32.partialorder %v311_v48, 0.0  ;;  %vm132_vm2 = vcmp.eq.f32.partialorder %v313_v49, inf }
  0x49   :  { %v91_v52 = vmul.f32 2.8102264e-08, %v316_v50  ;;  %v135_v0 = vand.u32 2147483648, %v313_v49  ;;  %vm134_vm3 = vcmp.eq.f32.partialorder %v313_v49, 0.0  ;;  %vm171_vm4 = vcmp.lt.f32.partialorder %v311_v48, 5.0 }
  0x4a   :  { %v92_v53 = vmul.f32 2.8102264e-08, %v320_v51  ;;  %vm172_vm5 = vcmp.lt.f32.partialorder %v313_v49, 5.0 }
  0x4b   :  { %v93_v54 = vadd.f32 3.4327394e-07, %v91_v52 }
  0x4c   :  { %v94_v55 = vadd.f32 3.4327394e-07, %v92_v53 }
  0x4d   :  { %v95_v56 = vmul.f32 %v316_v50, %v93_v54 }
  0x4e   :  { %v96_v57 = vmul.f32 %v320_v51, %v94_v55 }
  0x4f   :  { %v97_v58 = vadd.f32 -3.5233877e-06, %v95_v56 }
  0x50   :  { %v98_v60 = vadd.f32 -3.5233877e-06, %v96_v57 }
  0x51   :  { %v99_v2 = vmul.f32 %v316_v50, %v97_v58 }
  0x52   :  { %v100_v4 = vmul.f32 %v320_v51, %v98_v60 }
  0x53   :  { %v101_v10 = vadd.f32 -4.3915065e-06, %v99_v2 }
  0x54   :  { %v232_v59 = vpop.eup %231  ;;  %v102_v12 = vadd.f32 -4.3915065e-06, %v100_v4 }
  0x55   :  { %v234_v62 = vpop.eup %233  ;;  %v124_v63 = vmul.f32 %v232_v59, %v311_v48  ;;  %v103_v16 = vmul.f32 %v316_v50, %v101_v10 }
  0x56   :  { %v131_v1 = vmul.f32 %v234_v62, %v313_v49  ;;  %v104_v18 = vmul.f32 %v320_v51, %v102_v12 }
  0x57   :  { %v126_v3 = vsel %vm125_vm0, %v311_v48, %v124_v63  ;;  %v105_v22 = vadd.f32 0.00021858087, %v103_v16 }
  0x58   :  { %v129_v5 = vsel %vm127_vm1, %v128_v61, %v126_v3  ;;  %v133_v6 = vsel %vm132_vm2, %v313_v49, %v131_v1  ;;  %v106_v24 = vadd.f32 0.00021858087, %v104_v18 }
  0x59   :  { %v136_v7 = vsel %vm134_vm3, %v135_v0, %v133_v6  ;;  %v221_v8 = vadd.f32 -3.0, %v129_v5  ;;  %v107_v28 = vmul.f32 %v316_v50, %v105_v22 }
  0x5a   :  { %v222_v9 = vadd.f32 -3.0, %v136_v7  ;;  %v108_v30 = vmul.f32 %v320_v51, %v106_v24 }
  0x5b   :  { %v139_v11 = vmul.f32 -0.00020021426, %v221_v8  ;;  %v109_v36 = vadd.f32 -0.001253725, %v107_v28 }
  0x5c   :  { %v140_v13 = vmul.f32 -0.00020021426, %v222_v9  ;;  %v110_v38 = vadd.f32 -0.001253725, %v108_v30 }
  0x5d   :  { %v141_v14 = vadd.f32 0.00010095056, %v139_v11  ;;  %v111_v42 = vmul.f32 %v316_v50, %v109_v36 }
  0x5e   :  { %v142_v15 = vadd.f32 0.00010095056, %v140_v13  ;;  %v112_v43 = vmul.f32 %v320_v51, %v110_v38 }
  0x5f   :  { %v143_v17 = vmul.f32 %v221_v8, %v141_v14  ;;  %v113_v46 = vadd.f32 -0.0041776816, %v111_v42 }
  0x60   :  { %v144_v19 = vmul.f32 %v222_v9, %v142_v15  ;;  %v114_v47 = vadd.f32 -0.0041776816, %v112_v43 }
  0x61   :  { %v145_v20 = vadd.f32 0.0013493432, %v143_v17  ;;  %v115_v54 = vmul.f32 %v316_v50, %v113_v46 }
  0x62   :  { %v146_v21 = vadd.f32 0.0013493432, %v144_v19  ;;  %v116_v55 = vmul.f32 %v320_v51, %v114_v47 }
  0x63   :  { %v147_v23 = vmul.f32 %v221_v8, %v145_v20  ;;  %v117_v58 = vadd.f32 0.24664073, %v115_v54 }
  0x64   :  { %v148_v25 = vmul.f32 %v222_v9, %v146_v21  ;;  %v118_v59 = vadd.f32 0.24664073, %v116_v55 }
  0x65   :  { %v149_v26 = vadd.f32 -0.0036734284, %v147_v23  ;;  %v119_v62 = vmul.f32 %v316_v50, %v117_v58 }
  0x66   :  { %v150_v27 = vadd.f32 -0.0036734284, %v148_v25  ;;  %v120_v63 = vmul.f32 %v320_v51, %v118_v59  ;;  %v179_v51 = vld [vmem:[#allocation2] sm:$0xff] }
  0x67   :  { %v151_v29 = vmul.f32 %v221_v8, %v149_v26  ;;  %v121_v2 = vadd.f32 1.5014094, %v119_v62 }
  0x68   :  { %v152_v31 = vmul.f32 %v222_v9, %v150_v27  ;;  %v122_v3 = vadd.f32 1.5014094, %v120_v63 }
  0x69   :  { %v153_v32 = vadd.f32 0.0057395077, %v151_v29 }
  0x6a   :  { %v154_v33 = vadd.f32 0.0057395077, %v152_v31 }
  0x6b   :  { %v155_v37 = vmul.f32 %v221_v8, %v153_v32 }
  0x6c   :  { %v156_v39 = vmul.f32 %v222_v9, %v154_v33 }
  0x6d   :  { %v157_v40 = vadd.f32 -0.0076224613, %v155_v37 }
  0x6e   :  { %v158_v41 = vadd.f32 -0.0076224613, %v156_v39 }
  0x6f   :  { %v159_v44 = vmul.f32 %v221_v8, %v157_v40 }
  0x70   :  { %v160_v45 = vmul.f32 %v222_v9, %v158_v41 }
  0x71   :  { %v161_v52 = vadd.f32 0.0094388705, %v159_v44 }
  0x72   :  { %v162_v53 = vadd.f32 0.0094388705, %v160_v45 }
  0x73   :  { %v163_v56 = vmul.f32 %v221_v8, %v161_v52 }
  0x74   :  { %v164_v57 = vmul.f32 %v222_v9, %v162_v53 }
  0x75   :  { %v165_v60 = vadd.f32 1.001674, %v163_v56 }
  0x76   :  { %v166_v61 = vadd.f32 1.001674, %v164_v57 }
  0x77   :  { %v167_v0 = vmul.f32 %v221_v8, %v165_v60  ;;  %v180_v8 = vld [vmem:[#allocation2 + $0x8] sm:$0xff] }
  0x78   :  { %v168_v1 = vmul.f32 %v222_v9, %v166_v61 }
  0x79   :  { %v169_v4 = vadd.f32 2.8329768, %v167_v0 }
  0x7a   :  { %v170_v5 = vadd.f32 2.8329768, %v168_v1 }
  0x7b   :  { %v173_v6 = vsel %vm171_vm4, %v121_v2, %v169_v4 }
  0x7c   :  { %v174_v7 = vsel %vm172_vm5, %v122_v3, %v170_v5  ;;  %v175_v10 = vmul.f32 %v303_v34, %v173_v6 }
  0x7d   :  { %v176_v11 = vmul.f32 %v305_v35, %v174_v7 }
  0x7e   :  { %v177_v12 = vmul.f32 1.4142135, %v175_v10 }
  0x7f   :  { %v178_v50 = vmul.f32 1.4142135, %v176_v11 }
  0x8b   :  { %v186_v13 = vpop.permute.xlu0 %185 }
  0x8c   :  { %v188_v9 = vmul.f32 %v186_v13, %v177_v12  ;;  %v189_v14 = vmul.f32 %v186_v13, %v178_v50 }
  0x8e   :  { %v190_v15 = vadd.f32 %v188_v9, %v179_v51  ;;  %v191_v16 = vadd.f32 %v189_v14, %v180_v8 }
  0x90   :  { %192 = vst [vmem:[#allocation5] sm:$0xff] %v190_v15  ;;  %193 = vst [vmem:[#allocation5 + $0x8] sm:$0xff] %v191_v16 }
  0x91   :  { %266 = shalt.err (!%p263_p9)
}
  0x92   :  { %203 = dma.vmem_to_hbm [thread:$0]  %s201_s1, 256, %s358_s2, [#allocation4]  }
  0x93   :  { %277 = dma.done.wait [#allocation4], 256  }
  0x94   :  { %278 = vsyncadd [#allocation4], 4294967040 }
  0x95   :  { %207 = vsyncpa [#allocation3], 1 }
  0x96   :  { %208 = vsyncpa [#allocation4], 1 }

</bundles_post_ra>
